<compile_context>
chip_gen: v7x
topology: tpu7x:2x2x1
jax: 0.10.0
libtpu: 0.0.40
codegen_flags: <defaults>
</compile_context>

<pallas_src>
import jax
import jax.numpy as jnp
from jax.experimental import pallas as pl
from jax.experimental.pallas import tpu as pltpu

DT = 0.01  # Encoder_L96.dt


def l96_rk4_kernel(f_ref, x_ref, o_ref):
    # x_ref: (N, W) f32  -- one batch element, natural layout (N=sublane, W=lane)
    # o_ref: (N, W+1) f32
    x = x_ref[...]
    f = f_ref[0]                       # scalar parameter F (SMEM)
    n = x.shape[0]
    w = x.shape[1]

    def ode(xv):
        # dpred[i] = (x[i+1] - x[i-2]) * x[i-1] - x[i] + F   (circular in i)
        xm1 = pltpu.roll(xv, 1, axis=0)          # x[(i-1) % N]
        xm2 = pltpu.roll(xm1, 1, axis=0)         # x[(i-2) % N]  (chained roll)
        xp1 = pltpu.roll(xv, n - 1, axis=0)      # x[(i+1) % N]  (non-negative shift)
        return (xp1 - xm2) * xm1 - xv + f

    k1 = ode(x)
    k2 = ode(x + 0.5 * DT * k1)
    k3 = ode(x + 0.5 * DT * k2)
    k4 = ode(x + DT * k3)
    xpred = x + DT * (k1 + 2.0 * k2 + 2.0 * k3 + k4) / 6.0

    # Fused output concat (Decoder is identity / *1.0):
    #   column 0 <- input column 0 ; columns 1..W <- RK4 prediction.
    o_ref[:, pl.ds(0, 1)] = x[:, 0:1]
    o_ref[:, pl.ds(1, w)] = xpred


def model_l96_forward(x, f_param):
    """x: (B, 1, N, W) float32 (NCHW, like the PyTorch module). Returns (B, 1, N, W+1)."""
    B, C, N, W = x.shape
    assert C == 1
    return pl.pallas_call(
        l96_rk4_kernel,
        out_shape=jax.ShapeDtypeStruct((B, C, N, W + 1), x.dtype),
        grid=(B,),
        in_specs=[
            pl.BlockSpec(memory_space=pltpu.MemorySpace.SMEM),          # F parameter
            pl.BlockSpec((None, None, N, W), lambda b: (b, 0, 0, 0)),   # kernel sees (N, W)
        ],
        out_specs=pl.BlockSpec((None, None, N, W + 1), lambda b: (b, 0, 0, 0)),
        compiler_params=pltpu.CompilerParams(
            dimension_semantics=("parallel",)),
    )(f_param, x)


def _ref_forward(x, f_param):
    # Pure-JAX reference mirroring the PyTorch module exactly (NCHW).
    f = f_param[0]

    def ode(xin):
        xp1 = jnp.roll(xin, -1, axis=2)
        xm2 = jnp.roll(xin, 2, axis=2)
        xm1 = jnp.roll(xin, 1, axis=2)
        return (xp1 - xm2) * xm1 - xin + f

    k1 = ode(x)
    k2 = ode(x + 0.5 * DT * k1)
    k3 = ode(x + 0.5 * DT * k2)
    k4 = ode(x + DT * k3)
    xpred = x + DT * (k1 + 2.0 * k2 + 2.0 * k3 + k4) / 6.0
    return 1.0 * jnp.concatenate([x[:, :, :, 0:1], xpred], axis=3)


if __name__ == "__main__":
    key = jax.random.PRNGKey(0)
    B, C, N, W = 2, 1, 40, 8                       # small L96-style shapes
    x = jax.random.normal(key, (B, C, N, W), dtype=jnp.float32)
    f_param = jnp.array([8.0], dtype=jnp.float32)  # Encoder_L96.F parameter

    out = jax.jit(model_l96_forward)(x, f_param)
    out = jax.block_until_ready(out)

    ref = _ref_forward(x, f_param)
    assert out.shape == (B, C, N, W + 1), out.shape
    assert jnp.allclose(out, ref, atol=1e-5, rtol=1e-5)
    print("KERNEL_OK")
</pallas_src>

<mosaic_0001>
module attributes {stable_mosaic.version = 11 : i64} {
  func.func @l96_rk4_kernel(%arg0: i32, %arg1: memref<1xf32, #tpu.memory_space<smem>>, %arg2: memref<1x1x40x8xf32, #tpu.memory_space<vmem>>, %arg3: memref<1x1x40x9xf32, #tpu.memory_space<vmem>>) attributes {dimension_semantics = [#tpu.dimension_semantics<parallel>], iteration_bounds = array<i64: 2>, scalar_prefetch = 0 : i64, scratch_operands = 0 : i64, tpu.core_type = #tpu.core_type<tc>, window_params = [{transform_indices = @transform_0, window_bounds = array<i64: 1>}, {transform_indices = @transform_1, window_bounds = array<i64: 1, 1, 40, 8>}, {transform_indices = @transform_2, window_bounds = array<i64: 1, 1, 40, 9>}]} {
    %c0 = arith.constant 0 : index
    %c0_0 = arith.constant 0 : index
    %c0_1 = arith.constant 0 : index
    %c0_2 = arith.constant 0 : index
    %0 = vector.load %arg2[%c0, %c0_0, %c0_1, %c0_2] : memref<1x1x40x8xf32, #tpu.memory_space<vmem>>, vector<1x1x40x8xf32>
    %1 = vector.shape_cast %0 : vector<1x1x40x8xf32> to vector<40x8xf32>
    %c0_3 = arith.constant 0 : index
    %2 = memref.load %arg1[%c0_3] : memref<1xf32, #tpu.memory_space<smem>>
    %c1_i32 = arith.constant 1 : i32
    %3 = tpu.dynamic_rotate %1 by %c1_i32 dim 0 : vector<40x8xf32>, i32 -> vector<40x8xf32>
    %c1_i32_4 = arith.constant 1 : i32
    %4 = tpu.dynamic_rotate %3 by %c1_i32_4 dim 0 : vector<40x8xf32>, i32 -> vector<40x8xf32>
    %c39_i32 = arith.constant 39 : i32
    %5 = tpu.dynamic_rotate %1 by %c39_i32 dim 0 : vector<40x8xf32>, i32 -> vector<40x8xf32>
    %6 = arith.subf %5, %4 : vector<40x8xf32>
    %7 = arith.mulf %6, %3 : vector<40x8xf32>
    %8 = arith.subf %7, %1 : vector<40x8xf32>
    %9 = vector.broadcast %2 : f32 to vector<40x8xf32>
    %10 = arith.addf %8, %9 : vector<40x8xf32>
    %cst = arith.constant 5.000000e-03 : f32
    %11 = vector.broadcast %cst : f32 to vector<40x8xf32>
    %12 = arith.mulf %11, %10 : vector<40x8xf32>
    %13 = arith.addf %1, %12 : vector<40x8xf32>
    %c1_i32_5 = arith.constant 1 : i32
    %14 = tpu.dynamic_rotate %13 by %c1_i32_5 dim 0 : vector<40x8xf32>, i32 -> vector<40x8xf32>
    %c1_i32_6 = arith.constant 1 : i32
    %15 = tpu.dynamic_rotate %14 by %c1_i32_6 dim 0 : vector<40x8xf32>, i32 -> vector<40x8xf32>
    %c39_i32_7 = arith.constant 39 : i32
    %16 = tpu.dynamic_rotate %13 by %c39_i32_7 dim 0 : vector<40x8xf32>, i32 -> vector<40x8xf32>
    %17 = arith.subf %16, %15 : vector<40x8xf32>
    %18 = arith.mulf %17, %14 : vector<40x8xf32>
    %19 = arith.subf %18, %13 : vector<40x8xf32>
    %20 = vector.broadcast %2 : f32 to vector<40x8xf32>
    %21 = arith.addf %19, %20 : vector<40x8xf32>
    %cst_8 = arith.constant 5.000000e-03 : f32
    %22 = vector.broadcast %cst_8 : f32 to vector<40x8xf32>
    %23 = arith.mulf %22, %21 : vector<40x8xf32>
    %24 = arith.addf %1, %23 : vector<40x8xf32>
    %c1_i32_9 = arith.constant 1 : i32
    %25 = tpu.dynamic_rotate %24 by %c1_i32_9 dim 0 : vector<40x8xf32>, i32 -> vector<40x8xf32>
    %c1_i32_10 = arith.constant 1 : i32
    %26 = tpu.dynamic_rotate %25 by %c1_i32_10 dim 0 : vector<40x8xf32>, i32 -> vector<40x8xf32>
    %c39_i32_11 = arith.constant 39 : i32
    %27 = tpu.dynamic_rotate %24 by %c39_i32_11 dim 0 : vector<40x8xf32>, i32 -> vector<40x8xf32>
    %28 = arith.subf %27, %26 : vector<40x8xf32>
    %29 = arith.mulf %28, %25 : vector<40x8xf32>
    %30 = arith.subf %29, %24 : vector<40x8xf32>
    %31 = vector.broadcast %2 : f32 to vector<40x8xf32>
    %32 = arith.addf %30, %31 : vector<40x8xf32>
    %cst_12 = arith.constant 0.00999999977 : f32
    %33 = vector.broadcast %cst_12 : f32 to vector<40x8xf32>
    %34 = arith.mulf %33, %32 : vector<40x8xf32>
    %35 = arith.addf %1, %34 : vector<40x8xf32>
    %c1_i32_13 = arith.constant 1 : i32
    %36 = tpu.dynamic_rotate %35 by %c1_i32_13 dim 0 : vector<40x8xf32>, i32 -> vector<40x8xf32>
    %c1_i32_14 = arith.constant 1 : i32
    %37 = tpu.dynamic_rotate %36 by %c1_i32_14 dim 0 : vector<40x8xf32>, i32 -> vector<40x8xf32>
    %c39_i32_15 = arith.constant 39 : i32
    %38 = tpu.dynamic_rotate %35 by %c39_i32_15 dim 0 : vector<40x8xf32>, i32 -> vector<40x8xf32>
    %39 = arith.subf %38, %37 : vector<40x8xf32>
    %40 = arith.mulf %39, %36 : vector<40x8xf32>
    %41 = arith.subf %40, %35 : vector<40x8xf32>
    %42 = vector.broadcast %2 : f32 to vector<40x8xf32>
    %43 = arith.addf %41, %42 : vector<40x8xf32>
    %cst_16 = arith.constant 2.000000e+00 : f32
    %44 = vector.broadcast %cst_16 : f32 to vector<40x8xf32>
    %45 = arith.mulf %44, %21 : vector<40x8xf32>
    %46 = arith.addf %10, %45 : vector<40x8xf32>
    %cst_17 = arith.constant 2.000000e+00 : f32
    %47 = vector.broadcast %cst_17 : f32 to vector<40x8xf32>
    %48 = arith.mulf %47, %32 : vector<40x8xf32>
    %49 = arith.addf %46, %48 : vector<40x8xf32>
    %50 = arith.addf %49, %43 : vector<40x8xf32>
    %cst_18 = arith.constant 0.00999999977 : f32
    %51 = vector.broadcast %cst_18 : f32 to vector<40x8xf32>
    %52 = arith.mulf %51, %50 : vector<40x8xf32>
    %cst_19 = arith.constant 6.000000e+00 : f32
    %53 = vector.broadcast %cst_19 : f32 to vector<40x8xf32>
    %54 = arith.divf %52, %53 : vector<40x8xf32>
    %55 = arith.addf %1, %54 : vector<40x8xf32>
    %56 = vector.extract_strided_slice %1 {offsets = [0, 0], sizes = [40, 1], strides = [1, 1]} : vector<40x8xf32> to vector<40x1xf32>
    %c0_20 = arith.constant 0 : index
    %c0_21 = arith.constant 0 : index
    %c0_22 = arith.constant 0 : index
    %c0_23 = arith.constant 0 : index
    %57 = vector.load %arg3[%c0_20, %c0_21, %c0_22, %c0_23] : memref<1x1x40x9xf32, #tpu.memory_space<vmem>>, vector<1x1x40x1xf32>
    %58 = vector.shape_cast %57 : vector<1x1x40x1xf32> to vector<40x1xf32>
    %59 = vector.shape_cast %56 : vector<40x1xf32> to vector<1x1x40x1xf32>
    tpu.vector_store %arg3[%c0_20, %c0_21, %c0_22, %c0_23], %59 {strides = array<i32>} : memref<1x1x40x9xf32, #tpu.memory_space<vmem>>, vector<1x1x40x1xf32>,
    %c0_24 = arith.constant 0 : index
    %c0_25 = arith.constant 0 : index
    %c0_26 = arith.constant 0 : index
    %c1 = arith.constant 1 : index
    %60 = vector.load %arg3[%c0_24, %c0_25, %c0_26, %c1] : memref<1x1x40x9xf32, #tpu.memory_space<vmem>>, vector<1x1x40x8xf32>
    %61 = vector.shape_cast %60 : vector<1x1x40x8xf32> to vector<40x8xf32>
    %62 = vector.shape_cast %55 : vector<40x8xf32> to vector<1x1x40x8xf32>
    tpu.vector_store %arg3[%c0_24, %c0_25, %c0_26, %c1], %62 {strides = array<i32>} : memref<1x1x40x9xf32, #tpu.memory_space<vmem>>, vector<1x1x40x8xf32>,
    return
  }
  func.func @transform_0(%arg0: i32) -> i32 {
    %c0_i32 = arith.constant 0 : i32
    %c0_i32_0 = arith.constant 0 : i32
    return %c0_i32 : i32
  }
  func.func @transform_1(%arg0: i32) -> (i32, i32, i32, i32) {
    %c0_i32 = arith.constant 0 : i32
    %c0_i32_0 = arith.constant 0 : i32
    %c0_i32_1 = arith.constant 0 : i32
    %c0_i32_2 = arith.constant 0 : i32
    return %arg0, %c0_i32, %c0_i32_0, %c0_i32_1 : i32, i32, i32, i32
  }
  func.func @transform_2(%arg0: i32) -> (i32, i32, i32, i32) {
    %c0_i32 = arith.constant 0 : i32
    %c0_i32_0 = arith.constant 0 : i32
    %c0_i32_1 = arith.constant 0 : i32
    %c0_i32_2 = arith.constant 0 : i32
    return %arg0, %c0_i32, %c0_i32_0, %c0_i32_1 : i32, i32, i32, i32
  }
}

</mosaic_0001>

<bundles_post_ra>
// kernel: model_l96_forward.1
= control target key start
LH: loop header
LB: loop body
LE: loop exit
PB: predicated region body
PF: predicated region fallthrough
CT: control target
= control target key end

     0   :  { %s560_s11 = smov 0   ;;  %s826_s0 = inlined_call_operand.<no memory space> [shape: f32[1], index: 0, kind: input, shape index: {}]   ;;  %s827_s1 = inlined_call_operand.vmem [shape: f32[2,1,40,8], index: 1, kind: input, shape index: {}]   ;;  %s828_s2 = inlined_call_operand.vmem [shape: f32[2,1,40,9], index: 2, kind: output, shape index: {}]  }
   0x1   :  { %7 = sst [smem:[#allocation2]] %s826_s0 }
   0x2 LB: > { %s514_s12 = sadd.s32 4294967295, %s539_s11   ;;  %p518_p0 = scmp.ge.s32.totalorder %s539_s11, 1  ;;  %s539_s11 = sphi %s560_s11, %s13_s11  }
   0x3   : > { %p113_p1 = scmp.lt.s32.totalorder %s539_s11, 3 }
   0x5   : > { %p114_p2 = pnand %p518_p0, %p113_p1 }
   0x6   : > { %p135_p3 = scmp.lt.s32.totalorder (!%p114_p2), %s514_s12, 1  ;;  %v156_v0 = vlaneseq (!%p114_p2)  ;;  %vm427_vm0 = vcmask (!%p114_p2), 7168   ;;  %s613_s19 = sld [smem:[#allocation2]] (!%p114_p2)  ;;  %vm453_vm3 = vcmask (!%p114_p2), 72712  }
   0x7   : > { %117 = sbr.rel (%p114_p2) target bundleno = 223 (0xdf), region = 28  ;;  %s541_s20 = smov (!%p114_p2), 1  }
   0x8   : > { %v568_v1 = vshrl.u32 (!%p114_p2), %v156_v0, 7 }
   0xa   : > { %vm158_vm1 = vcmp.lt.s32.totalorder (!%p114_p2), %v568_v1, 1  ;;  %vm179_vm2 = vcmp.lt.s32.totalorder (!%p114_p2), %v568_v1, 7 }
   0xc   : > { %v648_v47 = vstv (!%p114_p2), %s613_s19 }
   0xe   : > { %s830_s12 = smov (!%p135_p3, %s514_s12), 1 }
   0xf   : > { %s523_s0 = smul.u32 40, %s830_s12 }
  0x11   : > { %s139_s15 = scalar_lea.vmem %s827_s1, %s523_s0  ;;  %s576_s18 = scalar_lea.vmem %s828_s2, %s523_s0 }
  0x12   : > { %v578_v2 = vld [vmem:[%s139_s15] sm:$0xff]  ;;  %v580_v3 = vld [vmem:[%s139_s15 + $0x8] sm:$0xff]  ;;  %v582_v4 = vld [vmem:[%s139_s15 + $0x10] sm:$0xff] }
  0x13   : > { %v586_v5 = vld [vmem:[%s139_s15 + $0x18] sm:$0xff]  ;;  %v588_v6 = vld [vmem:[%s139_s15 + $0x20] sm:$0xff]  ;;  %v151_v7 = vrot.slane %v578_v2, 7  ;;  %v152_v8 = vrot.slane %v580_v3, 7  ;;  %v153_v9 = vrot.slane %v582_v4, 7  ;;  %v174_v10 = vrot.slane %v578_v2, 1 }
  0x14   : > { %428 = vst.msk [vmem:[%s576_s18] sm:$0xff] %vm427_vm0, %v578_v2  ;;  %429 = vst.msk [vmem:[%s576_s18 + $0x8] sm:$0xff] %vm427_vm0, %v580_v3  ;;  %v154_v11 = vrot.slane %v586_v5, 7  ;;  %v155_v12 = vrot.slane %v588_v6, 7  ;;  %v175_v13 = vrot.slane %v580_v3, 1  ;;  %v176_v14 = vrot.slane %v582_v4, 1 }
  0x15   : > { %430 = vst.msk [vmem:[%s576_s18 + $0x10] sm:$0xff] %vm427_vm0, %v582_v4  ;;  %431 = vst.msk [vmem:[%s576_s18 + $0x18] sm:$0xff] %vm427_vm0, %v586_v5  ;;  %v161_v15 = vsel %vm158_vm1, %v152_v8, %v153_v9  ;;  %v162_v16 = vsel %vm158_vm1, %v151_v7, %v152_v8  ;;  %v177_v17 = vrot.slane %v586_v5, 1  ;;  %v178_v18 = vrot.slane %v588_v6, 1 }
  0x16   : > { %432 = vst.msk [vmem:[%s576_s18 + $0x20] sm:$0xff] %vm427_vm0, %v588_v6  ;;  %v159_v19 = vsel %vm158_vm1, %v154_v11, %v155_v12  ;;  %v160_v20 = vsel %vm158_vm1, %v153_v9, %v154_v11  ;;  %v163_v21 = vsel %vm158_vm1, %v155_v12, %v151_v7  ;;  %v165_v22 = vrot.slane %v162_v16, 7 }
  0x17   : > { %v164_v23 = vrot.slane %v163_v21, 7  ;;  %v166_v24 = vrot.slane %v161_v15, 7  ;;  %v167_v25 = vrot.slane %v160_v20, 7  ;;  %v168_v26 = vrot.slane %v159_v19, 7 }
  0x18   : > { %v180_v27 = vsel %vm179_vm2, %v177_v17, %v178_v18  ;;  %v181_v28 = vsel %vm179_vm2, %v176_v14, %v177_v17  ;;  %v182_v29 = vsel %vm179_vm2, %v175_v13, %v176_v14  ;;  %v183_v30 = vsel %vm179_vm2, %v174_v10, %v175_v13 }
  0x19   : > { %v169_v31 = vsel %vm158_vm1, %v167_v25, %v168_v26  ;;  %v170_v32 = vsel %vm158_vm1, %v166_v24, %v167_v25  ;;  %v171_v33 = vsel %vm158_vm1, %v165_v22, %v166_v24  ;;  %v172_v34 = vsel %vm158_vm1, %v164_v23, %v165_v22 }
  0x1a   : > { %v173_v35 = vsel %vm158_vm1, %v168_v26, %v164_v23  ;;  %v184_v36 = vsel %vm179_vm2, %v178_v18, %v174_v10  ;;  %v186_v37 = vsub.f32 %v182_v29, %v172_v34  ;;  %v187_v38 = vsub.f32 %v181_v28, %v171_v33 }
  0x1b   : > { %v185_v39 = vsub.f32 %v183_v30, %v173_v35  ;;  %v188_v40 = vsub.f32 %v180_v27, %v170_v32  ;;  %v189_v41 = vsub.f32 %v184_v36, %v169_v31 }
  0x1c   : > { %v191_v42 = vmul.f32 %v186_v37, %v162_v16  ;;  %v192_v43 = vmul.f32 %v187_v38, %v161_v15 }
  0x1d   : > { %v190_v44 = vmul.f32 %v185_v39, %v163_v21  ;;  %v193_v45 = vmul.f32 %v188_v40, %v160_v20  ;;  %v194_v46 = vmul.f32 %v189_v41, %v159_v19 }
  0x1e   : > { %v196_v48 = vsub.f32 %v191_v42, %v580_v3  ;;  %v197_v49 = vsub.f32 %v192_v43, %v582_v4 }
  0x1f   : > { %v195_v50 = vsub.f32 %v190_v44, %v578_v2  ;;  %v198_v51 = vsub.f32 %v193_v45, %v586_v5  ;;  %v199_v52 = vsub.f32 %v194_v46, %v588_v6 }
  0x20   : > { %v656_v53 = vadd.f32 %v648_v47, %v196_v48  ;;  %v659_v54 = vadd.f32 %v648_v47, %v197_v49 }
  0x21   : > { %v662_v55 = vadd.f32 %v648_v47, %v195_v50  ;;  %v665_v56 = vadd.f32 %v648_v47, %v198_v51  ;;  %v668_v57 = vadd.f32 %v648_v47, %v199_v52 }
  0x22   : > { %v207_v58 = vmul.f32 0.005, %v656_v53  ;;  %v208_v59 = vmul.f32 0.005, %v659_v54 }
  0x23   : > { %v206_v60 = vmul.f32 0.005, %v662_v55  ;;  %v209_v61 = vmul.f32 0.005, %v665_v56  ;;  %v210_v62 = vmul.f32 0.005, %v668_v57 }
  0x24   : > { %v212_v63 = vadd.f32 %v207_v58, %v580_v3  ;;  %v213_v0 = vadd.f32 %v208_v59, %v582_v4 }
  0x25   : > { %v211_v7 = vadd.f32 %v206_v60, %v578_v2  ;;  %v214_v8 = vadd.f32 %v209_v61, %v586_v5  ;;  %v215_v9 = vadd.f32 %v210_v62, %v588_v6 }
  0x26   : > { %v217_v10 = vrot.slane %v212_v63, 7  ;;  %v218_v11 = vrot.slane %v213_v0, 7  ;;  %v237_v12 = vrot.slane %v212_v63, 1  ;;  %v238_v13 = vrot.slane %v213_v0, 1 }
  0x27   : > { %v216_v14 = vrot.slane %v211_v7, 7  ;;  %v219_v15 = vrot.slane %v214_v8, 7  ;;  %v220_v16 = vrot.slane %v215_v9, 7  ;;  %v236_v17 = vrot.slane %v211_v7, 1 }
  0x28   : > { %v223_v18 = vsel %vm158_vm1, %v217_v10, %v218_v11  ;;  %v239_v19 = vrot.slane %v214_v8, 1  ;;  %v240_v20 = vrot.slane %v215_v9, 1  ;;  %v243_v21 = vsel %vm179_vm2, %v237_v12, %v238_v13 }
  0x29   : > { %v221_v22 = vsel %vm158_vm1, %v219_v15, %v220_v16  ;;  %v222_v23 = vsel %vm158_vm1, %v218_v11, %v219_v15  ;;  %v224_v24 = vsel %vm158_vm1, %v216_v14, %v217_v10  ;;  %v225_v25 = vsel %vm158_vm1, %v220_v16, %v216_v14 }
  0x2a   : > { %v226_v26 = vrot.slane %v225_v25, 7  ;;  %v227_v27 = vrot.slane %v224_v24, 7  ;;  %v228_v28 = vrot.slane %v223_v18, 7  ;;  %v229_v29 = vrot.slane %v222_v23, 7 }
  0x2b   : > { %v230_v30 = vrot.slane %v221_v22, 7  ;;  %v241_v31 = vsel %vm179_vm2, %v239_v19, %v240_v20  ;;  %v242_v32 = vsel %vm179_vm2, %v238_v13, %v239_v19  ;;  %v244_v33 = vsel %vm179_vm2, %v236_v17, %v237_v12 }
  0x2c   : > { %v232_v34 = vsel %vm158_vm1, %v228_v28, %v229_v29  ;;  %v233_v35 = vsel %vm158_vm1, %v227_v27, %v228_v28  ;;  %v234_v36 = vsel %vm158_vm1, %v226_v26, %v227_v27  ;;  %v245_v37 = vsel %vm179_vm2, %v240_v20, %v236_v17 }
  0x2d   : > { %v231_v38 = vsel %vm158_vm1, %v229_v29, %v230_v30  ;;  %v235_v39 = vsel %vm158_vm1, %v230_v30, %v226_v26  ;;  %v247_v40 = vsub.f32 %v243_v21, %v234_v36  ;;  %v248_v41 = vsub.f32 %v242_v32, %v233_v35 }
  0x2e   : > { %v246_v42 = vsub.f32 %v244_v33, %v235_v39  ;;  %v249_v43 = vsub.f32 %v241_v31, %v232_v34  ;;  %v250_v44 = vsub.f32 %v245_v37, %v231_v38 }
  0x2f   : > { %v252_v45 = vmul.f32 %v247_v40, %v224_v24  ;;  %v253_v46 = vmul.f32 %v248_v41, %v223_v18 }
  0x30   : > { %v251_v48 = vmul.f32 %v246_v42, %v225_v25  ;;  %v254_v49 = vmul.f32 %v249_v43, %v222_v23  ;;  %v255_v50 = vmul.f32 %v250_v44, %v221_v22 }
  0x31   : > { %v257_v51 = vsub.f32 %v252_v45, %v212_v63  ;;  %v258_v52 = vsub.f32 %v253_v46, %v213_v0 }
  0x32   : > { %v256_v58 = vsub.f32 %v251_v48, %v211_v7  ;;  %v259_v59 = vsub.f32 %v254_v49, %v214_v8  ;;  %v260_v60 = vsub.f32 %v255_v50, %v215_v9 }
  0x33   : > { %v262_v61 = vadd.f32 %v257_v51, %v648_v47  ;;  %v263_v62 = vadd.f32 %v258_v52, %v648_v47 }
  0x34   : > { %v261_v10 = vadd.f32 %v256_v58, %v648_v47  ;;  %v264_v11 = vadd.f32 %v259_v59, %v648_v47  ;;  %v265_v12 = vadd.f32 %v260_v60, %v648_v47 }
  0x35   : > { %v267_v13 = vmul.f32 0.005, %v262_v61  ;;  %v268_v14 = vmul.f32 0.005, %v263_v62 }
  0x36   : > { %v266_v15 = vmul.f32 0.005, %v261_v10  ;;  %v269_v16 = vmul.f32 0.005, %v264_v11  ;;  %v270_v17 = vmul.f32 0.005, %v265_v12 }
  0x37   : > { %v272_v63 = vadd.f32 %v267_v13, %v580_v3  ;;  %v273_v0 = vadd.f32 %v268_v14, %v582_v4 }
  0x38   : > { %v271_v7 = vadd.f32 %v266_v15, %v578_v2  ;;  %v274_v8 = vadd.f32 %v269_v16, %v586_v5  ;;  %v275_v9 = vadd.f32 %v270_v17, %v588_v6  ;;  %v388_v15 = vmul.f32 2.0, %v263_v62 }
  0x39   : > { %v277_v18 = vrot.slane %v272_v63, 7  ;;  %v278_v19 = vrot.slane %v273_v0, 7  ;;  %v297_v20 = vrot.slane %v272_v63, 1  ;;  %v298_v21 = vrot.slane %v273_v0, 1 }
  0x3a   : > { %v276_v22 = vrot.slane %v271_v7, 7  ;;  %v279_v23 = vrot.slane %v274_v8, 7  ;;  %v280_v24 = vrot.slane %v275_v9, 7  ;;  %v296_v25 = vrot.slane %v271_v7, 1 }
  0x3b   : > { %v283_v26 = vsel %vm158_vm1, %v277_v18, %v278_v19  ;;  %v299_v27 = vrot.slane %v274_v8, 1  ;;  %v300_v28 = vrot.slane %v275_v9, 1  ;;  %v303_v29 = vsel %vm179_vm2, %v297_v20, %v298_v21 }
  0x3c   : > { %v281_v30 = vsel %vm158_vm1, %v279_v23, %v280_v24  ;;  %v282_v31 = vsel %vm158_vm1, %v278_v19, %v279_v23  ;;  %v284_v32 = vsel %vm158_vm1, %v276_v22, %v277_v18  ;;  %v285_v33 = vsel %vm158_vm1, %v280_v24, %v276_v22 }
  0x3d   : > { %v286_v34 = vrot.slane %v285_v33, 7  ;;  %v287_v35 = vrot.slane %v284_v32, 7  ;;  %v288_v36 = vrot.slane %v283_v26, 7  ;;  %v289_v37 = vrot.slane %v282_v31, 7 }
  0x3e   : > { %v290_v38 = vrot.slane %v281_v30, 7  ;;  %v301_v39 = vsel %vm179_vm2, %v299_v27, %v300_v28  ;;  %v304_v40 = vsel %vm179_vm2, %v296_v25, %v297_v20  ;;  %v305_v41 = vsel %vm179_vm2, %v300_v28, %v296_v25 }
  0x3f   : > { %v292_v42 = vsel %vm158_vm1, %v288_v36, %v289_v37  ;;  %v294_v43 = vsel %vm158_vm1, %v286_v34, %v287_v35  ;;  %v293_v44 = vsel %vm158_vm1, %v287_v35, %v288_v36  ;;  %v302_v52 = vsel %vm179_vm2, %v298_v21, %v299_v27 }
  0x40   : > { %v291_v45 = vsel %vm158_vm1, %v289_v37, %v290_v38  ;;  %v295_v46 = vsel %vm158_vm1, %v290_v38, %v286_v34  ;;  %v307_v48 = vsub.f32 %v303_v29, %v294_v43  ;;  %v309_v49 = vsub.f32 %v301_v39, %v292_v42 }
  0x41   : > { %v306_v50 = vsub.f32 %v304_v40, %v295_v46  ;;  %v310_v51 = vsub.f32 %v305_v41, %v291_v45  ;;  %v308_v60 = vsub.f32 %v302_v52, %v293_v44  ;;  %v387_v19 = vmul.f32 2.0, %v262_v61 }
  0x42   : > { %v312_v58 = vmul.f32 %v307_v48, %v284_v32  ;;  %v314_v59 = vmul.f32 %v309_v49, %v282_v31  ;;  %v386_v23 = vmul.f32 2.0, %v261_v10  ;;  %v389_v24 = vmul.f32 2.0, %v264_v11 }
  0x43   : > { %v311_v13 = vmul.f32 %v306_v50, %v285_v33  ;;  %v315_v14 = vmul.f32 %v310_v51, %v281_v30  ;;  %v313_v18 = vmul.f32 %v308_v60, %v283_v26  ;;  %v390_v21 = vmul.f32 2.0, %v265_v12 }
  0x44   : > { %v317_v16 = vsub.f32 %v312_v58, %v272_v63  ;;  %v319_v17 = vsub.f32 %v314_v59, %v274_v8  ;;  %v755_v62 = vadd.f32 %v388_v15, %v659_v54  ;;  %v392_v10 = vadd.f32 %v387_v19, %v656_v53 }
  0x45   : > { %v316_v20 = vsub.f32 %v311_v13, %v271_v7  ;;  %v320_v22 = vsub.f32 %v315_v14, %v275_v9  ;;  %v318_v29 = vsub.f32 %v313_v18, %v273_v0  ;;  %v391_v9 = vadd.f32 %v386_v23, %v662_v55 }
  0x46   : > { %v322_v25 = vadd.f32 %v317_v16, %v648_v47  ;;  %v324_v28 = vadd.f32 %v319_v17, %v648_v47  ;;  %v394_v0 = vadd.f32 %v389_v24, %v665_v56  ;;  %v395_v54 = vadd.f32 %v390_v21, %v668_v57 }
  0x47   : > { %v321_v27 = vadd.f32 %v316_v20, %v648_v47  ;;  %v325_v31 = vadd.f32 %v320_v22, %v648_v47  ;;  %v323_v61 = vadd.f32 %v318_v29, %v648_v47 }
  0x48   : > { %v327_v63 = vmul.f32 0.01, %v322_v25  ;;  %v329_v8 = vmul.f32 0.01, %v324_v28  ;;  %v397_v34 = vmul.f32 2.0, %v322_v25  ;;  %v399_v43 = vmul.f32 2.0, %v324_v28 }
  0x49   : > { %v326_v11 = vmul.f32 0.01, %v321_v27  ;;  %v330_v7 = vmul.f32 0.01, %v325_v31  ;;  %v328_v30 = vmul.f32 0.01, %v323_v61 }
  0x4a   : > { %v332_v12 = vadd.f32 %v327_v63, %v580_v3  ;;  %v763_v26 = vadd.f32 %v329_v8, %v586_v5  ;;  %v396_v53 = vmul.f32 2.0, %v321_v27  ;;  %v398_v20 = vmul.f32 2.0, %v323_v61 }
  0x4b   : > { %v331_v32 = vadd.f32 %v326_v11, %v578_v2  ;;  %v768_v33 = vadd.f32 %v330_v7, %v588_v6  ;;  %v333_v56 = vadd.f32 %v328_v30, %v582_v4  ;;  %v402_v7 = vadd.f32 %v397_v34, %v392_v10 }
  0x4c   : > { %v339_v35 = vrot.slane %v763_v26, 7  ;;  %v357_v55 = vrot.slane %v332_v12, 1  ;;  %v337_v36 = vrot.slane %v332_v12, 7  ;;  %v359_v40 = vrot.slane %v763_v26, 1 }
  0x4d   : > { %v336_v37 = vrot.slane %v331_v32, 7  ;;  %v340_v38 = vrot.slane %v768_v33, 7  ;;  %v356_v39 = vrot.slane %v331_v32, 1  ;;  %v338_v57 = vrot.slane %v333_v56, 7 }
  0x4e   : > { %v358_v41 = vrot.slane %v333_v56, 1  ;;  %v360_v42 = vrot.slane %v768_v33, 1  ;;  %v401_v8 = vadd.f32 %v396_v53, %v391_v9  ;;  %v400_v30 = vmul.f32 2.0, %v325_v31 }
  0x4f   : > { %v341_v44 = vsel %vm158_vm1, %v339_v35, %v340_v38  ;;  %v345_v45 = vsel %vm158_vm1, %v340_v38, %v336_v37  ;;  %v364_v46 = vsel %vm179_vm2, %v356_v39, %v357_v55  ;;  %v344_v48 = vsel %vm158_vm1, %v336_v37, %v337_v36 }
  0x50   : > { %v346_v49 = vrot.slane %v345_v45, 7  ;;  %v350_v50 = vrot.slane %v341_v44, 7  ;;  %v343_v51 = vsel %vm158_vm1, %v337_v36, %v338_v57  ;;  %v347_v52 = vrot.slane %v344_v48, 7 }
  0x51   : > { %v348_v58 = vrot.slane %v343_v51, 7  ;;  %v362_v59 = vsel %vm179_vm2, %v358_v41, %v359_v40  ;;  %v363_v60 = vsel %vm179_vm2, %v357_v55, %v358_v41  ;;  %v342_v13 = vsel %vm158_vm1, %v338_v57, %v339_v35 }
  0x52   : > { %v355_v14 = vsel %vm158_vm1, %v350_v50, %v346_v49  ;;  %v354_v15 = vsel %vm158_vm1, %v346_v49, %v347_v52  ;;  %v349_v16 = vrot.slane %v342_v13, 7  ;;  %v361_v17 = vsel %vm179_vm2, %v359_v40, %v360_v42 }
  0x53   : > { %v366_v18 = vsub.f32 %v364_v46, %v355_v14  ;;  %v353_v19 = vsel %vm158_vm1, %v347_v52, %v348_v58  ;;  %v367_v22 = vsub.f32 %v363_v60, %v354_v15  ;;  %v365_v28 = vsel %vm179_vm2, %v360_v42, %v356_v39 }
  0x54   : > { %v368_v23 = vsub.f32 %v362_v59, %v353_v19  ;;  %v352_v24 = vsel %vm158_vm1, %v348_v58, %v349_v16  ;;  %v351_v25 = vsel %vm158_vm1, %v349_v16, %v350_v50  ;;  %v403_v38 = vadd.f32 %v398_v20, %v755_v62 }
  0x55   : > { %v371_v29 = vmul.f32 %v366_v18, %v345_v45  ;;  %v372_v21 = vmul.f32 %v367_v22, %v344_v48  ;;  %v369_v27 = vsub.f32 %v361_v17, %v352_v24  ;;  %v370_v63 = vsub.f32 %v365_v28, %v351_v25 }
  0x56   : > { %v373_v11 = vmul.f32 %v368_v23, %v343_v51  ;;  %v404_v40 = vadd.f32 %v399_v43, %v394_v0  ;;  %v405_v57 = vadd.f32 %v400_v30, %v395_v54 }
  0x57   : > { %v376_v61 = vsub.f32 %v371_v29, %v331_v32  ;;  %v377_v35 = vsub.f32 %v372_v21, %v332_v12  ;;  %v374_v55 = vmul.f32 %v369_v27, %v342_v13  ;;  %v375_v36 = vmul.f32 %v370_v63, %v341_v44 }
  0x58   : > { %v378_v37 = vsub.f32 %v373_v11, %v333_v56 }
  0x59   : > { %v381_v1 = vadd.f32 %v376_v61, %v648_v47  ;;  %v382_v39 = vadd.f32 %v377_v35, %v648_v47  ;;  %v379_v41 = vsub.f32 %v374_v55, %v763_v26  ;;  %v380_v9 = vsub.f32 %v375_v36, %v768_v33 }
  0x5a   : > { %v383_v10 = vadd.f32 %v378_v37, %v648_v47 }
  0x5b   : > { %v406_v31 = vadd.f32 %v401_v8, %v381_v1  ;;  %v407_v32 = vadd.f32 %v402_v7, %v382_v39  ;;  %v384_v12 = vadd.f32 %v379_v41, %v648_v47  ;;  %v385_v53 = vadd.f32 %v380_v9, %v648_v47 }
  0x5c   : > { %v408_v34 = vadd.f32 %v403_v38, %v383_v10 }
  0x5d   : > { %v411_v62 = vmul.f32 0.01, %v406_v31  ;;  %v412_v0 = vmul.f32 0.01, %v407_v32  ;;  %v409_v54 = vadd.f32 %v404_v40, %v384_v12  ;;  %v410_v56 = vadd.f32 %v405_v57, %v385_v53 }
  0x5e   : > { %v413_v42 = vmul.f32 0.01, %v408_v34 }
  0x5f   : > { %v417_v43 = vmul.f32 0.16666667, %v411_v62  ;;  %v418_v44 = vmul.f32 0.16666667, %v412_v0  ;;  %v414_v45 = vmul.f32 0.01, %v409_v54 }
  0x60   : > { %v419_v26 = vmul.f32 0.16666667, %v413_v42  ;;  %v415_v46 = vmul.f32 0.01, %v410_v56 }
  0x61   : > { %v422_v33 = vadd.f32 %v417_v43, %v578_v2  ;;  %v420_v48 = vmul.f32 0.16666667, %v414_v45  ;;  %v423_v47 = vadd.f32 %v418_v44, %v580_v3 }
  0x62   : > { %v424_v49 = vadd.f32 %v419_v26, %v582_v4  ;;  %v421_v50 = vmul.f32 0.16666667, %v415_v46 }
  0x63   : > { %438 = vrot.lane.b32.xlu0 %v422_v33, %s541_s20  ;;  %v425_v51 = vadd.f32 %v420_v48, %v586_v5 }
  0x64   : > { %442 = vrot.lane.b32.xlu1 %v424_v49, %s541_s20  ;;  %v426_v52 = vadd.f32 %v421_v50, %v588_v6 }
  0x67   : > { %440 = vrot.lane.b32.xlu0 %v423_v47, %s541_s20 }
  0x68   : > { %444 = vrot.lane.b32.xlu1 %v425_v51, %s541_s20 }
  0x6b   : > { %446 = vrot.lane.b32.xlu0 %v426_v52, %s541_s20 }
  0xd5   : > { %v439_v2 = vpop.permute.xlu0 %438 }
  0xd6   : > { %454 = vst.msk [vmem:[%s576_s18] sm:$0xff] %vm453_vm3, %v439_v2  ;;  %v443_v4 = vpop.permute.xlu1 %442 }
  0xd7   : > { %456 = vst.msk [vmem:[%s576_s18 + $0x10] sm:$0xff] %vm453_vm3, %v443_v4 }
  0xd9   : > { %v441_v58 = vpop.permute.xlu0 %440 }
  0xda   : > { %455 = vst.msk [vmem:[%s576_s18 + $0x8] sm:$0xff] %vm453_vm3, %v441_v58  ;;  %v445_v59 = vpop.permute.xlu1 %444 }
  0xdb   : > { %457 = vst.msk [vmem:[%s576_s18 + $0x18] sm:$0xff] %vm453_vm3, %v445_v59 }
  0xdd   : > { %v447_v3 = vpop.permute.xlu0 %446 }
  0xde   : > { %458 = vst.msk [vmem:[%s576_s18 + $0x20] sm:$0xff] %vm453_vm3, %v447_v3 }
  0xdf PF: > { %s13_s11 = sadd.s32 1, %s539_s11  }
  0xe0   : > { %p10_p4 = scmp.ge.s32.totalorder %s13_s11, 4  }
  0xe2   :  { %12 = sbr.rel (!%p10_p4) target bundleno = 2 (0x2), region = 58 }

</bundles_post_ra>
